<compile_context>
chip_gen: v5e
topology: v5e:2x2
jax: 0.10.0
libtpu: 0.0.40
codegen_flags: <defaults>
</compile_context>

<pallas_src>
import jax
import jax.numpy as jnp
from jax.experimental import pallas as pl
from jax.experimental.pallas import tpu as pltpu


def _round_up(n, m):
    return ((n + m - 1) // m) * m


def _mlp_kernel(x_ref, w1_ref, b1_ref, w2_ref, b2_ref, o_ref):
    # x_ref:  (TB, D_in) f32     w1_ref: (D_in, H_pad) bf16   b1_ref: (1, H_pad) f32
    # w2_ref: (H_pad, D_out) bf16  b2_ref: (1, D_out) f32     o_ref:  (TB, D_out)
    x = x_ref[...].astype(jnp.bfloat16)
    h = jnp.dot(x, w1_ref[...], preferred_element_type=jnp.float32) + b1_ref[...]
    h = jnp.maximum(h, 0.0)                                    # ReLU (f32)
    z = jnp.dot(h.astype(jnp.bfloat16), w2_ref[...],
                preferred_element_type=jnp.float32) + b2_ref[...]
    # Exact sigmoid: exp on the EUP, one exact divide.  (approx reciprocal was
    # flagged as a correctness risk for labels thresholded at 0.5.)
    o_ref[...] = (1.0 / (1.0 + jnp.exp(-z))).astype(o_ref.dtype)


def make_mlp_forward(w1, b1, w2, b2, *, block_batch=2048, hidden_pad_multiple=256):
    """Packs PyTorch-convention params once and returns a jitted forward fn.

    w1: (H, D_in), b1: (H,), w2: (D_out, H), b2: (D_out,)  (nn.Linear layout).
    hidden_pad_multiple: 256 fills the bf16 MXU on v6e/v7x; use 128 on v5e.
    """
    H, D_in = w1.shape
    D_out = w2.shape[0]
    H_pad = _round_up(H, hidden_pad_multiple)

    # One-time glue: transpose to (in, out) layout, cast weights to bf16, and
    # zero-pad the hidden dim.  Exact-zero pads (weights AND bias) guarantee
    # padded hidden units are relu(0) = 0 and contribute 0 through matmul2.
    w1_p = jnp.zeros((D_in, H_pad), jnp.bfloat16).at[:, :H].set(w1.T.astype(jnp.bfloat16))
    b1_p = jnp.zeros((1, H_pad), jnp.float32).at[0, :H].set(b1.astype(jnp.float32))
    w2_p = jnp.zeros((H_pad, D_out), jnp.bfloat16).at[:H, :].set(w2.T.astype(jnp.bfloat16))
    b2_p = b2.astype(jnp.float32).reshape(1, D_out)

    weight_bytes = (w1_p.size * w1_p.dtype.itemsize + b1_p.size * b1_p.dtype.itemsize +
                    w2_p.size * w2_p.dtype.itemsize + b2_p.size * b2_p.dtype.itemsize)

    @jax.jit
    def forward(x):
        B = x.shape[0]
        itemsize = jnp.dtype(x.dtype).itemsize

        # ---- batch tile selection ------------------------------------------
        if B <= min(block_batch, 1024):
            # Single full-batch block (block == full array dim is layout-legal).
            tb = B
        else:
            # Always >= 2 grid steps so the "parallel" axis can shard across
            # v7x's two TensorCores; cap at block_batch.
            tb = min(block_batch, _round_up(-(-B // 2), 8))

        # VMEM budget: keep 2 (double-buffer) * TB * (x row + out row) plus the
        # resident weights under ~24 MiB (default scoped limit is 32 MiB; v7x
        # physical VMEM is only 64 MiB).
        row_bytes = (D_in + D_out) * itemsize
        max_rows = max(8, ((24 * 1024 * 1024 - weight_bytes) // (2 * row_bytes)) // 8 * 8)
        tb = min(tb, max_rows)
        nb = pl.cdiv(B, tb)
        # NOTE: when B % tb != 0 the last grid step reads x rows past B; each
        # output row depends only on its own input row and OOB output rows are
        # masked on writeback, so results for rows < B are unaffected.

        cost = pl.CostEstimate(
            flops=2 * B * (D_in * H_pad + H_pad * D_out),
            transcendentals=B * D_out,
            bytes_accessed=int(B * D_in * itemsize + weight_bytes + B * D_out * itemsize),
        )

        return pl.pallas_call(
            _mlp_kernel,
            out_shape=jax.ShapeDtypeStruct((B, D_out), x.dtype),
            grid_spec=pltpu.PrefetchScalarGridSpec(
                num_scalar_prefetch=0,
                grid=(nb,),
                in_specs=[
                    pl.BlockSpec((tb, D_in), lambda i: (i, 0)),
                    # Weights/biases: constant block index -> VMEM-resident
                    # across all grid steps.
                    pl.BlockSpec((D_in, H_pad), lambda i: (0, 0)),
                    pl.BlockSpec((1, H_pad), lambda i: (0, 0)),
                    pl.BlockSpec((H_pad, D_out), lambda i: (0, 0)),
                    pl.BlockSpec((1, D_out), lambda i: (0, 0)),
                ],
                out_specs=pl.BlockSpec((tb, D_out), lambda i: (i, 0)),
            ),
            compiler_params=pltpu.CompilerParams(
                dimension_semantics=("parallel",),
            ),
            cost_estimate=cost,
        )(x, w1_p, b1_p, w2_p, b2_p)

    return forward


def _reference_forward(x, w1, b1, w2, b2):
    h = jnp.maximum(x @ w1.T + b1, 0.0)
    return jax.nn.sigmoid(h @ w2.T + b2)


if __name__ == "__main__":
    # Small shapes consistent with the module's forward:
    batch = 2
    input_dim = 32
    output_dim = 8
    hidden_dim = (input_dim + output_dim) // 2   # = 20, as in __init__

    key = jax.random.PRNGKey(0)
    kx, k1, k2, k3, k4 = jax.random.split(key, 5)

    x = jax.random.normal(kx, (batch, input_dim), dtype=jnp.float32)

    # Deterministic param init mimicking PyTorch nn.Linear (uniform +-1/sqrt(fan_in)).
    bound1 = 1.0 / jnp.sqrt(jnp.float32(input_dim))
    bound2 = 1.0 / jnp.sqrt(jnp.float32(hidden_dim))
    w1 = jax.random.uniform(k1, (hidden_dim, input_dim), jnp.float32, -bound1, bound1)
    b1 = jax.random.uniform(k2, (hidden_dim,), jnp.float32, -bound1, bound1)
    w2 = jax.random.uniform(k3, (output_dim, hidden_dim), jnp.float32, -bound2, bound2)
    b2 = jax.random.uniform(k4, (output_dim,), jnp.float32, -bound2, bound2)

    forward = make_mlp_forward(w1, b1, w2, b2)
    y = forward(x)
    jax.block_until_ready(y)

    y_ref = _reference_forward(x, w1, b1, w2, b2)
    assert y.shape == (batch, output_dim)
    # Tolerance accounts for bf16 matmul inputs (f32 accumulation); observed
    # error is well below this bound after the sigmoid compression.
    assert jnp.allclose(y, y_ref, atol=1e-2, rtol=1e-2), "mismatch vs JAX reference"

    print("KERNEL_OK")
</pallas_src>

<mosaic_0001>
module attributes {stable_mosaic.version = 11 : i64} {
  func.func @_mlp_kernel(%arg0: i32, %arg1: memref<2x32xf32, #tpu.memory_space<vmem>>, %arg2: memref<32x256xbf16, #tpu.memory_space<vmem>>, %arg3: memref<1x256xf32, #tpu.memory_space<vmem>>, %arg4: memref<256x8xbf16, #tpu.memory_space<vmem>>, %arg5: memref<1x8xf32, #tpu.memory_space<vmem>>, %arg6: memref<2x8xf32, #tpu.memory_space<vmem>>) attributes {dimension_semantics = [#tpu.dimension_semantics<parallel>], iteration_bounds = array<i64: 1>, scalar_prefetch = 0 : i64, scratch_operands = 0 : i64, tpu.core_type = #tpu.core_type<tc>, window_params = [{transform_indices = @transform_0, window_bounds = array<i64: 2, 32>}, {pipeline_mode = #tpu.pipeline_mode<synchronous>, transform_indices = @transform_1, window_bounds = array<i64: 32, 256>}, {pipeline_mode = #tpu.pipeline_mode<synchronous>, transform_indices = @transform_2, window_bounds = array<i64: 1, 256>}, {pipeline_mode = #tpu.pipeline_mode<synchronous>, transform_indices = @transform_3, window_bounds = array<i64: 256, 8>}, {pipeline_mode = #tpu.pipeline_mode<synchronous>, transform_indices = @transform_4, window_bounds = array<i64: 1, 8>}, {transform_indices = @transform_5, window_bounds = array<i64: 2, 8>}]} {
    %c0 = arith.constant 0 : index
    %c0_0 = arith.constant 0 : index
    %0 = vector.load %arg1[%c0, %c0_0] : memref<2x32xf32, #tpu.memory_space<vmem>>, vector<2x32xf32>
    %1 = arith.truncf %0 : vector<2x32xf32> to vector<2x32xbf16>
    %c0_1 = arith.constant 0 : index
    %c0_2 = arith.constant 0 : index
    %2 = vector.load %arg2[%c0_1, %c0_2] : memref<32x256xbf16, #tpu.memory_space<vmem>>, vector<32x256xbf16>
    %cst = arith.constant dense<0.000000e+00> : vector<2x256xf32>
    %3 = tpu.matmul %1, %2, %cst {dimension_numbers = #tpu.dot_dimension_numbers<[1], [0], [0], [1], [0, 0, 1, 1], [], []>} : vector<2x32xbf16>, vector<32x256xbf16>, vector<2x256xf32> -> vector<2x256xf32>
    %c0_3 = arith.constant 0 : index
    %c0_4 = arith.constant 0 : index
    %4 = vector.load %arg3[%c0_3, %c0_4] : memref<1x256xf32, #tpu.memory_space<vmem>>, vector<1x256xf32>
    %5 = vector.broadcast %4 : vector<1x256xf32> to vector<2x256xf32>
    %6 = arith.addf %3, %5 : vector<2x256xf32>
    %cst_5 = arith.constant 0.000000e+00 : f32
    %7 = vector.broadcast %cst_5 : f32 to vector<2x256xf32>
    %8 = arith.maximumf %6, %7 : vector<2x256xf32>
    %9 = arith.truncf %8 : vector<2x256xf32> to vector<2x256xbf16>
    %c0_6 = arith.constant 0 : index
    %c0_7 = arith.constant 0 : index
    %10 = vector.load %arg4[%c0_6, %c0_7] : memref<256x8xbf16, #tpu.memory_space<vmem>>, vector<256x8xbf16>
    %cst_8 = arith.constant dense<0.000000e+00> : vector<2x8xf32>
    %11 = tpu.matmul %9, %10, %cst_8 {dimension_numbers = #tpu.dot_dimension_numbers<[1], [0], [0], [1], [0, 0, 1, 1], [], []>} : vector<2x256xbf16>, vector<256x8xbf16>, vector<2x8xf32> -> vector<2x8xf32>
    %c0_9 = arith.constant 0 : index
    %c0_10 = arith.constant 0 : index
    %12 = vector.load %arg5[%c0_9, %c0_10] : memref<1x8xf32, #tpu.memory_space<vmem>>, vector<1x8xf32>
    %13 = vector.broadcast %12 : vector<1x8xf32> to vector<2x8xf32>
    %14 = arith.addf %11, %13 : vector<2x8xf32>
    %cst_11 = arith.constant 0.000000e+00 : f32
    %15 = vector.broadcast %cst_11 : f32 to vector<2x8xf32>
    %16 = arith.subf %15, %14 : vector<2x8xf32>
    %17 = math.exp %16 : vector<2x8xf32>
    %cst_12 = arith.constant 1.000000e+00 : f32
    %18 = vector.broadcast %cst_12 : f32 to vector<2x8xf32>
    %19 = arith.addf %18, %17 : vector<2x8xf32>
    %cst_13 = arith.constant 1.000000e+00 : f32
    %20 = vector.broadcast %cst_13 : f32 to vector<2x8xf32>
    %21 = arith.divf %20, %19 : vector<2x8xf32>
    %c0_14 = arith.constant 0 : index
    %c0_15 = arith.constant 0 : index
    %22 = vector.load %arg6[%c0_14, %c0_15] : memref<2x8xf32, #tpu.memory_space<vmem>>, vector<2x8xf32>
    tpu.vector_store %arg6[%c0_14, %c0_15], %21 {strides = array<i32>} : memref<2x8xf32, #tpu.memory_space<vmem>>, vector<2x8xf32>,
    return
  }
  func.func @transform_0(%arg0: i32) -> (i32, i32) {
    %c0_i32 = arith.constant 0 : i32
    %c0_i32_0 = arith.constant 0 : i32
    return %arg0, %c0_i32 : i32, i32
  }
  func.func @transform_1(%arg0: i32) -> (i32, i32) {
    %c0_i32 = arith.constant 0 : i32
    %c0_i32_0 = arith.constant 0 : i32
    %c0_i32_1 = arith.constant 0 : i32
    return %c0_i32, %c0_i32_0 : i32, i32
  }
  func.func @transform_2(%arg0: i32) -> (i32, i32) {
    %c0_i32 = arith.constant 0 : i32
    %c0_i32_0 = arith.constant 0 : i32
    %c0_i32_1 = arith.constant 0 : i32
    return %c0_i32, %c0_i32_0 : i32, i32
  }
  func.func @transform_3(%arg0: i32) -> (i32, i32) {
    %c0_i32 = arith.constant 0 : i32
    %c0_i32_0 = arith.constant 0 : i32
    %c0_i32_1 = arith.constant 0 : i32
    return %c0_i32, %c0_i32_0 : i32, i32
  }
  func.func @transform_4(%arg0: i32) -> (i32, i32) {
    %c0_i32 = arith.constant 0 : i32
    %c0_i32_0 = arith.constant 0 : i32
    %c0_i32_1 = arith.constant 0 : i32
    return %c0_i32, %c0_i32_0 : i32, i32
  }
  func.func @transform_5(%arg0: i32) -> (i32, i32) {
    %c0_i32 = arith.constant 0 : i32
    %c0_i32_0 = arith.constant 0 : i32
    return %arg0, %c0_i32 : i32, i32
  }
}

</mosaic_0001>

<bundles_post_ra>
// kernel: forward.1
= control target key start
LH: loop header
LB: loop body
LE: loop exit
PB: predicated region body
PF: predicated region fallthrough
CT: control target
= control target key end

     0   :  { %10 = vsyncpa [#allocation3], 0  ;;  %s646_s0 = inlined_call_operand.hbm [shape: f32[2,32], index: 0, kind: input, shape index: {}]   ;;  %s647_s1 = inlined_call_operand.hbm [shape: bf16[32,256], index: 1, kind: input, shape index: {}]   ;;  %s648_s2 = inlined_call_operand.hbm [shape: f32[1,256], index: 2, kind: input, shape index: {}]   ;;  %s649_s3 = inlined_call_operand.hbm [shape: bf16[256,8], index: 3, kind: input, shape index: {}]   ;;  %s650_s4 = inlined_call_operand.vmem [shape: f32[1,8], index: 4, kind: input, shape index: {}]   ;;  %s651_s5 = inlined_call_operand.hbm [shape: f32[2,8], index: 5, kind: output, shape index: {}]  }
   0x1   :  { %11 = vsyncpa [#allocation6], 0 }
   0x2   :  { %12 = vsyncpa [#allocation9], 0  ;;  %s29_s20 = sshll.u32 %s647_s1, 4  ;;  %s30_s20 = int_to_ptr.hbm [resolvable:$true] %s29_s20 }
   0x3   :  { %13 = vsyncpa [#allocation4], 0  ;;  %s589_s21 = smov [#allocation5]   ;;  %s19_s25 = sshll.u32 %s646_s0, 4  ;;  %s20_s25 = int_to_ptr.hbm [resolvable:$true] %s19_s25 }
   0x4   :  { %s31_s22 = sshll.u32 %s589_s21, 4  ;;  %s590_s26 = smov 128   ;;  %s32_s22 = int_to_ptr.vmem [resolvable:$true] %s31_s22 }
   0x5   :  { %s591_s27 = smov 8   ;;  %s592_s28 = smov [#allocation2]  }
   0x6   :  { %37 = dma.hbm_to_vmem [thread:$0]  %s30_s20, 512, %s32_s22, [#allocation6], %s590_s26, %s590_s26, %s591_s27  }
   0x7   :  { %s21_s29 = sshll.u32 %s592_s28, 4  ;;  %s43_s7 = sshll.u32 %s648_s2, 4  ;;  %s22_s29 = int_to_ptr.vmem [resolvable:$true] %s21_s29  ;;  %s44_s7 = int_to_ptr.hbm [resolvable:$true] %s43_s7 }
   0x8   :  { %24 = dma.hbm_to_vmem [thread:$0]  %s20_s25, 32, %s22_s29, [#allocation3]  }
   0x9   :  { %s53_s9 = sshll.u32 %s649_s3, 4  ;;  %s593_s10 = smov [#allocation7]   ;;  %s54_s9 = int_to_ptr.hbm [resolvable:$true] %s53_s9 }
   0xa   :  { %s45_s11 = sshll.u32 %s593_s10, 4  ;;  %s594_s0 = smov [#allocation8]   ;;  %s46_s11 = int_to_ptr.vmem [resolvable:$true] %s45_s11 }
   0xb   :  { %48 = dma.hbm_to_vmem [thread:$0]  %s44_s7, 32, %s46_s11, [#allocation6]  }
   0xc   :  { %s55_s12 = sshll.u32 %s594_s0, 4  ;;  %s595_s13 = smov 64   ;;  %s56_s12 = int_to_ptr.vmem [resolvable:$true] %s55_s12 }
   0xd   :  { %s596_s14 = smov 4  }
   0xe   :  { %61 = dma.hbm_to_vmem [thread:$0]  %s54_s9, 2048, %s56_s12, [#allocation9], %s595_s13, %s595_s13, %s596_s14  }
   0xf   :  { %581 = dma.done.wait [#allocation3], 32  }
  0x10   :  { %582 = vsyncadd [#allocation3], 4294967264 }
  0x11   :  { %583 = dma.done.wait [#allocation6], 544  }
  0x12   :  { %584 = vsyncadd [#allocation6], 4294966752 }
  0x13   :  { %585 = dma.done.wait [#allocation9], 2048  }
  0x14   :  { %586 = vsyncadd [#allocation9], 4294965248  ;;  %v355_v0 = vld [vmem:[#allocation5 + $0x10] sm:$0xf]  ;;  %v430_v1 = vld [vmem:[#allocation5 + $0x14] sm:$0xf0] }
  0x15   :  { %v429_v2 = vld [vmem:[#allocation5 + $0x14] sm:$0xf]  ;;  %v356_v3 = vor.u32 %v430_v1, %v355_v0  ;;  %v357_v4 = vld [vmem:[#allocation5 + $0x18] sm:$0xf0]  ;;  %v347_v5 = vld [vmem:[#allocation5] sm:$0xf] }
  0x16   :  { %v428_v6 = vld [vmem:[#allocation5 + $0x4] sm:$0xf0]  ;;  %v360_v7 = vor.u32 %v429_v2, %v357_v4  ;;  %v427_v8 = vld [vmem:[#allocation5 + $0x4] sm:$0xf]  ;;  %v349_v9 = vld [vmem:[#allocation5 + $0x8] sm:$0xf0] }
  0x17   :  { %123 = vmatpush.bf16.msra.mxu0 %v356_v3  ;;  %v348_v10 = vor.u32 %v428_v6, %v347_v5  ;;  %v81_v11 = vld [vmem:[#allocation2] sm:$0x3]  ;;  %v352_v14 = vor.u32 %v427_v8, %v349_v9  ;;  %v437_v15 = vld [vmem:[#allocation8 + $0x30] sm:$0xff]  ;;  %vm113_vm0 = vcmask 261120   ;;  %v436_v18 = vld [vmem:[#allocation8 + $0x28] sm:$0xff]  ;;  %s333_s18 = sshll.u32 %s651_s5, 4  ;;  %s334_s18 = int_to_ptr.hbm [resolvable:$true] %s333_s18 }
  0x18   :  { %v438_v12 = vld [vmem:[#allocation8 + $0x38] sm:$0xff]  ;;  %136 = vmatpush.bf16.msra.mxu1 %v360_v7  ;;  %v445_v16 = vld [vmem:[#allocation8 + $0x70] sm:$0xff]  ;;  %v82_v17 = vpack.c.bf16 %v81_v11, %v81_v11  ;;  %v444_v19 = vld [vmem:[#allocation8 + $0x68] sm:$0xff]  ;;  %vm324_vm4 = vcmask 58368  }
  0x19   :  { %v446_v13 = vld [vmem:[#allocation8 + $0x78] sm:$0xff]  ;;  %279 = vmatpush.bf16.msra.mxu2 %v438_v12  ;;  %v435_v20 = vld [vmem:[#allocation8 + $0x20] sm:$0xff]  ;;  %v433_v24 = vld [vmem:[#allocation8 + $0x10] sm:$0xff] }
  0x1a   :  { %292 = vmatpush.bf16.msra.mxu3 %v446_v13  ;;  %v443_v21 = vld [vmem:[#allocation8 + $0x60] sm:$0xff]  ;;  %v434_v22 = vld [vmem:[#allocation8 + $0x18] sm:$0xff]  ;;  %v441_v25 = vld [vmem:[#allocation8 + $0x50] sm:$0xff] }
  0x1b   :  { %124 = vmatpush.bf16.msra.mxu0 %v348_v10  ;;  %v442_v23 = vld [vmem:[#allocation8 + $0x58] sm:$0xff]  ;;  %v432_v26 = vld [vmem:[#allocation8 + $0x8] sm:$0xff]  ;;  %v431_v28 = vld [vmem:[#allocation8] sm:$0xff] }
  0x1c   :  { %137 = vmatpush.bf16.msra.mxu1 %v352_v14  ;;  %v440_v27 = vld [vmem:[#allocation8 + $0x48] sm:$0xff]  ;;  %v439_v29 = vld [vmem:[#allocation8 + $0x40] sm:$0xff]  ;;  %v87_v30 = vld [vmem:[#allocation7] sm:$0x3] }
  0x1d   :  { %280 = vmatpush.bf16.msra.mxu2 %v437_v15  ;;  %v89_v31 = vperm.slane %v87_v30, 0  ;;  %v90_v32 = vperm.slane %v87_v30, 1  ;;  %v456_v43 = vld [vmem:[%s650_s4] ss:$0 sm:$0xff]  ;;  %s597_s4 = smov [#allocation10]  }
  0x1e   :  { %293 = vmatpush.bf16.msra.mxu3 %v445_v16  ;;  %361 = vmatmul.msk.bf16.vlgmr.msra.gmra.mxu0 %vm113_vm0, %v82_v17  ;;  %s331_s15 = sshll.u32 %s597_s4, 4  ;;  %s332_s15 = int_to_ptr.vmem [resolvable:$true] %s331_s15 }
  0x1f   :  { %362 = vmatmul.msk.bf16.vlgmr.msra.gmra.mxu1 %vm113_vm0, %v82_v17 }
  0x21   :  { %281 = vmatpush.bf16.msra.mxu2 %v436_v18 }
  0x22   :  { %294 = vmatpush.bf16.msra.mxu3 %v444_v19 }
  0x25   :  { %282 = vmatpush.bf16.msra.mxu2 %v435_v20 }
  0x26   :  { %295 = vmatpush.bf16.msra.mxu3 %v443_v21 }
  0x29   :  { %283 = vmatpush.bf16.msra.mxu2 %v434_v22 }
  0x2a   :  { %296 = vmatpush.bf16.msra.mxu3 %v442_v23 }
  0x2d   :  { %284 = vmatpush.bf16.msra.mxu2 %v433_v24 }
  0x2e   :  { %297 = vmatpush.bf16.msra.mxu3 %v441_v25 }
  0x31   :  { %285 = vmatpush.bf16.msra.mxu2 %v432_v26 }
  0x32   :  { %298 = vmatpush.bf16.msra.mxu3 %v440_v27 }
  0x35   :  { %286 = vmatpush.bf16.msra.mxu2 %v431_v28 }
  0x36   :  { %299 = vmatpush.bf16.msra.mxu3 %v439_v29 }
  0x9b   :  { %v126_v33 = vpop.f32.mrf.mxu0 }
  0x9c   :  { %v127_v34 = vadd.f32 %v126_v33, %v89_v31  ;;  %v139_v35 = vpop.f32.mrf.mxu1 }
  0x9d   :  { %v140_v36 = vadd.f32 %v139_v35, %v90_v32 }
  0x9e   :  { %v143_v37 = vmax.f32 %v127_v34, 0.0 }
  0x9f   :  { %v144_v38 = vmax.f32 %v140_v36, 0.0 }
  0xa0   :  { %v145_v39 = vpack.c.bf16 %v143_v37, %v143_v37 }
  0xa1   :  { %v146_v40 = vpack.c.bf16 %v144_v38, %v144_v38 }
  0xa2   :  { %287 = vmatmul.bf16.vlgmr.msra.gmra.mxu2 %v145_v39 }
  0xa3   :  { %300 = vmatmul.bf16.vlgmr.msra.gmra.mxu3 %v146_v40  ;;  %v128_v41 = vpop.f32.mrf.mxu0 }
  0xa4   :  { %v141_v42 = vpop.f32.mrf.mxu1 }
 0x125   :  { %v288_v44 = vpop.f32.mrf.mxu2 }
 0x126   :  { %v289_v45 = vadd.f32 %v456_v43, %v288_v44  ;;  %v301_v46 = vpop.f32.mrf.mxu3 }
 0x128   :  { %v302_v47 = vadd.f32 %v301_v46, %v289_v45 }
 0x12a   :  { %v305_v48 = vsub.f32 0.0, %v302_v47 }
 0x12c   :  { %v306_v49 = vmul.f32 1.442695, %v305_v48 }
 0x12d   :  { %v290_v50 = vpop.f32.mrf.mxu2 }
 0x12e   :  { %457 = vpow2.f32 %v306_v49  ;;  %v303_v51 = vpop.f32.mrf.mxu3 }
 0x134   :  { %v458_v52 = vpop.eup %457 }
 0x135   :  { %v308_v53 = vadd.f32 1.0, %v458_v52 }
 0x137   :  { %459 = vrcp.f32 %v308_v53  ;;  %v320_v57 = vand.u32 2147483648, %v308_v53  ;;  %v318_v59 = vand.u32 2147483647, %v308_v53  ;;  %vm314_vm2 = vweird.f32 %v308_v53 }
 0x139   :  { %v321_v61 = vor.u32 1.1754944e-38, %v320_v57  ;;  %vm319_vm5 = vcmp.eq.f32.partialorder %v318_v59, 8.507059e+37 }
 0x13d   :  { %v460_v54 = vpop.eup %459 }
 0x13e   :  { %v310_v55 = vmul.f32 %v460_v54, %v308_v53  ;;  %vm315_vm1 = vweird.f32 %v460_v54 }
 0x13f   :  { %vm316_vm3 = vmor %vm314_vm2, %vm315_vm1 }
 0x140   :  { %v311_v56 = vsub.f32 1.0, %v310_v55 }
 0x142   :  { %v312_v58 = vmul.f32 %v460_v54, %v311_v56 }
 0x144   :  { %v313_v60 = vadd.f32 %v460_v54, %v312_v58 }
 0x146   :  { %v317_v62 = vsel %vm316_vm3, %v460_v54, %v313_v60 }
 0x147   :  { %v322_v63 = vsel %vm319_vm5, %v321_v61, %v317_v62 }
 0x148   :  { %325 = vst.msk [vmem:[#allocation10] sm:$0x3] %vm324_vm4, %v322_v63 }
 0x149   :  { %336 = dma.vmem_to_hbm [thread:$0]  %s332_s15, 32, %s334_s18, [#allocation4]  }
 0x14a   :  { %587 = dma.done.wait [#allocation4], 32  }
 0x14b   :  { %588 = vsyncadd [#allocation4], 4294967264 }
 0x14c   :  { %341 = vsyncpa [#allocation3], 1 }
 0x14d   :  { %342 = vsyncpa [#allocation6], 1 }
 0x14e   :  { %343 = vsyncpa [#allocation9], 1 }
 0x14f   :  { %344 = vsyncpa [#allocation4], 1 }

</bundles_post_ra>
